<compile_context>
chip_gen: v7x
topology: tpu7x:2x2x1
jax: 0.10.0
libtpu: 0.0.40
codegen_flags: <defaults>
</compile_context>

<pallas_src>
import functools
import math

import jax
import jax.numpy as jnp
from jax.experimental import pallas as pl
from jax.experimental.pallas import tpu as pltpu

STATE_DIM = 8
ACT_DIM = 4
H1 = 256
H2 = 128


def _round_up(n, m):
    return ((n + m - 1) // m) * m


# ---------------------------------------------------------------------------
# Kernel: one batch tile per grid step; weights VMEM-resident across steps.
# ---------------------------------------------------------------------------
def _actor_kernel(
    x_ref,             # (TB, 8)
    w1_ref, b1_ref,    # (8, 256), (1, 256)
    w2_ref, b2_ref,    # (256, 128), (1, 128)
    wh_ref, bh_ref,    # (128, 8), (1, 8)   fused [mu | pre_std] heads
    eps_ref,           # (TB, 4)  standard-normal noise for rsample
    act_ref,           # out: (TB, 4) tanh-squashed action
    lp_ref,            # out: (1, 1) SMEM scalar, summed log-prob
    *, tb, n_valid, n_rows_total,
):
    i = pl.program_id(0)

    x = x_ref[...]

    # l1 + relu
    h1 = jnp.dot(x, w1_ref[...], preferred_element_type=jnp.float32) + b1_ref[...]
    h1 = jnp.maximum(h1, 0.0)

    # l2 + relu
    h2 = jnp.dot(h1, w2_ref[...], preferred_element_type=jnp.float32) + b2_ref[...]
    h2 = jnp.maximum(h2, 0.0)

    # fused heads: one MXU matmul, then split into mu / pre_std
    heads = jnp.dot(h2, wh_ref[...], preferred_element_type=jnp.float32) + bh_ref[...]
    mu = heads[:, :ACT_DIM]
    pre_std = heads[:, ACT_DIM:]

    # softplus, numerically stable: max(x,0) + log1p(exp(-|x|))
    std = jnp.maximum(pre_std, 0.0) + jnp.log1p(jnp.exp(-jnp.abs(pre_std)))

    # Normal(mu, std).rsample() via reparameterization
    eps = eps_ref[...]
    action = mu + std * eps

    # Normal(mu, std).log_prob(action); since (action - mu) == std * eps the
    # quadratic term is 0.5*eps^2 exactly (no divide, no 0/0 when std -> 0+).
    log_prob = -0.5 * (eps * eps) - jnp.log(std) - 0.5 * math.log(2.0 * math.pi)

    # tanh squash + change-of-variable correction (as written in the module)
    t = jnp.tanh(action)
    log_prob = log_prob - jnp.log(1.0 - t * t + 1e-07)

    act_ref[...] = t

    # Static check: only mask when the batch was padded to a full tile.
    if n_valid != n_rows_total:
        row = i * tb + jax.lax.broadcasted_iota(jnp.int32, log_prob.shape, 0)
        log_prob = jnp.where(row < n_valid, log_prob, 0.0)

    @pl.when(i == 0)
    def _():
        lp_ref[0, 0] = 0.0

    lp_ref[0, 0] += jnp.sum(log_prob)


# ---------------------------------------------------------------------------
# Wrapper: pads batch to a tile multiple, fuses head params, builds the grid.
# ---------------------------------------------------------------------------
def actor_forward(x, params, eps, *, batch_block=128):
    B = x.shape[0]
    tb = min(batch_block, _round_up(B, 8))
    b_pad = _round_up(B, tb)
    if b_pad != B:
        x = jnp.pad(x, ((0, b_pad - B), (0, 0)))
        eps = jnp.pad(eps, ((0, b_pad - B), (0, 0)))

    # Fuse the two heads outside the kernel (one matmul, fewer DMAs).
    wh = jnp.concatenate([params["w31"], params["w32"]], axis=1)   # (128, 8)
    bh = jnp.concatenate([params["b31"], params["b32"]], axis=1)   # (1, 8)

    kernel = functools.partial(
        _actor_kernel, tb=tb, n_valid=B, n_rows_total=b_pad)

    act_pad, lp = pl.pallas_call(
        kernel,
        out_shape=(
            jax.ShapeDtypeStruct((b_pad, ACT_DIM), jnp.float32),
            jax.ShapeDtypeStruct((1, 1), jnp.float32),
        ),
        grid_spec=pltpu.PrefetchScalarGridSpec(
            num_scalar_prefetch=0,
            grid=(b_pad // tb,),
            in_specs=[
                pl.BlockSpec((tb, STATE_DIM), lambda i: (i, 0)),       # x tile
                pl.BlockSpec((STATE_DIM, H1), lambda i: (0, 0)),       # w1 (resident)
                pl.BlockSpec((1, H1), lambda i: (0, 0)),               # b1
                pl.BlockSpec((H1, H2), lambda i: (0, 0)),              # w2
                pl.BlockSpec((1, H2), lambda i: (0, 0)),               # b2
                pl.BlockSpec((H2, 2 * ACT_DIM), lambda i: (0, 0)),     # fused head W
                pl.BlockSpec((1, 2 * ACT_DIM), lambda i: (0, 0)),      # fused head b
                pl.BlockSpec((tb, ACT_DIM), lambda i: (i, 0)),         # eps tile
            ],
            out_specs=(
                pl.BlockSpec((tb, ACT_DIM), lambda i: (i, 0)),         # action tile
                pl.BlockSpec(memory_space=pltpu.MemorySpace.SMEM),     # scalar log-prob
            ),
        ),
        compiler_params=pltpu.CompilerParams(
            # The summed log-prob accumulates across batch tiles, so the
            # batch axis must stay "arbitrary" (not megacore-parallel).
            dimension_semantics=("arbitrary",),
        ),
    )(x, params["w1"], params["b1"], params["w2"], params["b2"], wh, bh, eps)

    return act_pad[:B], lp[0, 0]


# ---------------------------------------------------------------------------
# Deterministic parameter init (PyTorch-style uniform(-1/sqrt(fan_in), +)).
# Weights stored as (in, out) so the kernel computes x @ W + b.
# ---------------------------------------------------------------------------
def init_params(key):
    def linear(k, fan_in, fan_out):
        kw, kb = jax.random.split(k)
        bound = 1.0 / math.sqrt(fan_in)
        w = jax.random.uniform(kw, (fan_in, fan_out), jnp.float32, -bound, bound)
        b = jax.random.uniform(kb, (1, fan_out), jnp.float32, -bound, bound)
        return w, b

    k1, k2, k3, k4 = jax.random.split(key, 4)
    w1, b1 = linear(k1, STATE_DIM, H1)
    w2, b2 = linear(k2, H1, H2)
    w31, b31 = linear(k3, H2, ACT_DIM)
    w32, b32 = linear(k4, H2, ACT_DIM)
    return dict(w1=w1, b1=b1, w2=w2, b2=b2,
                w31=w31, b31=b31, w32=w32, b32=b32)


# ---------------------------------------------------------------------------
# Pure-JAX reference (mirrors the PyTorch forward exactly).
# ---------------------------------------------------------------------------
def actor_forward_ref(x, p, eps):
    h1 = jax.nn.relu(x @ p["w1"] + p["b1"])
    h2 = jax.nn.relu(h1 @ p["w2"] + p["b2"])
    mu = h2 @ p["w31"] + p["b31"]
    std = jax.nn.softplus(h2 @ p["w32"] + p["b32"])
    action = mu + std * eps
    log_prob = (
        -((action - mu) ** 2) / (2.0 * std * std)
        - jnp.log(std)
        - 0.5 * math.log(2.0 * math.pi)
    )
    t = jnp.tanh(action)
    log_prob = log_prob - jnp.log(1.0 - t * t + 1e-07)
    return t, jnp.sum(log_prob)


if __name__ == "__main__":
    key = jax.random.PRNGKey(0)
    kp, kx, ke, kx2, ke2 = jax.random.split(key, 5)

    params = init_params(kp)

    # Case 1: batch = 8 (single full tile, no padding).
    B = 8
    x = jax.random.normal(kx, (B, STATE_DIM), jnp.float32)
    eps = jax.random.normal(ke, (B, ACT_DIM), jnp.float32)   # rsample noise
    act, lp = actor_forward(x, params, eps)
    jax.block_until_ready((act, lp))
    ref_act, ref_lp = actor_forward_ref(x, params, eps)
    assert act.shape == (B, ACT_DIM) and lp.shape == ()
    assert jnp.allclose(act, ref_act, atol=1e-5, rtol=1e-5)
    assert jnp.allclose(lp, ref_lp, atol=2e-3, rtol=1e-4)

    # Case 2: batch = 20 (exercises batch padding + masked log-prob sum).
    B2 = 20
    x2 = jax.random.normal(kx2, (B2, STATE_DIM), jnp.float32)
    eps2 = jax.random.normal(ke2, (B2, ACT_DIM), jnp.float32)
    act2, lp2 = actor_forward(x2, params, eps2)
    jax.block_until_ready((act2, lp2))
    ref_act2, ref_lp2 = actor_forward_ref(x2, params, eps2)
    assert jnp.allclose(act2, ref_act2, atol=1e-5, rtol=1e-5)
    assert jnp.allclose(lp2, ref_lp2, atol=2e-3, rtol=1e-4)

    # TODO(synk): optimizer state (Adam) and log_alpha training from the
    # PyTorch module are not part of the forward pass and are not implemented.
    print("KERNEL_OK")
</pallas_src>

<mosaic_0001>
module attributes {stable_mosaic.version = 11 : i64} {
  func.func @_actor_kernel(%arg0: i32, %arg1: memref<8x8xf32, #tpu.memory_space<vmem>>, %arg2: memref<8x256xf32, #tpu.memory_space<vmem>>, %arg3: memref<1x256xf32, #tpu.memory_space<vmem>>, %arg4: memref<256x128xf32, #tpu.memory_space<vmem>>, %arg5: memref<1x128xf32, #tpu.memory_space<vmem>>, %arg6: memref<128x8xf32, #tpu.memory_space<vmem>>, %arg7: memref<1x8xf32, #tpu.memory_space<vmem>>, %arg8: memref<8x4xf32, #tpu.memory_space<vmem>>, %arg9: memref<8x4xf32, #tpu.memory_space<vmem>>, %arg10: memref<1x1xf32, #tpu.memory_space<smem>>) attributes {dimension_semantics = [#tpu.dimension_semantics<arbitrary>], iteration_bounds = array<i64: 1>, scalar_prefetch = 0 : i64, scratch_operands = 0 : i64, tpu.core_type = #tpu.core_type<tc>, window_params = [{transform_indices = @transform_0, window_bounds = array<i64: 8, 8>}, {pipeline_mode = #tpu.pipeline_mode<synchronous>, transform_indices = @transform_1, window_bounds = array<i64: 8, 256>}, {pipeline_mode = #tpu.pipeline_mode<synchronous>, transform_indices = @transform_2, window_bounds = array<i64: 1, 256>}, {pipeline_mode = #tpu.pipeline_mode<synchronous>, transform_indices = @transform_3, window_bounds = array<i64: 256, 128>}, {pipeline_mode = #tpu.pipeline_mode<synchronous>, transform_indices = @transform_4, window_bounds = array<i64: 1, 128>}, {pipeline_mode = #tpu.pipeline_mode<synchronous>, transform_indices = @transform_5, window_bounds = array<i64: 128, 8>}, {pipeline_mode = #tpu.pipeline_mode<synchronous>, transform_indices = @transform_6, window_bounds = array<i64: 1, 8>}, {transform_indices = @transform_7, window_bounds = array<i64: 8, 4>}, {transform_indices = @transform_8, window_bounds = array<i64: 8, 4>}, {transform_indices = @transform_9, window_bounds = array<i64: 1, 1>}]} {
    %c0 = arith.constant 0 : index
    %c0_0 = arith.constant 0 : index
    %0 = vector.load %arg1[%c0, %c0_0] : memref<8x8xf32, #tpu.memory_space<vmem>>, vector<8x8xf32>
    %c0_1 = arith.constant 0 : index
    %c0_2 = arith.constant 0 : index
    %1 = vector.load %arg2[%c0_1, %c0_2] : memref<8x256xf32, #tpu.memory_space<vmem>>, vector<8x256xf32>
    %cst = arith.constant dense<0.000000e+00> : vector<8x256xf32>
    %2 = tpu.matmul %0, %1, %cst {dimension_numbers = #tpu.dot_dimension_numbers<[1], [0], [0], [1], [0, 0, 1, 1], [], []>} : vector<8x8xf32>, vector<8x256xf32>, vector<8x256xf32> -> vector<8x256xf32>
    %c0_3 = arith.constant 0 : index
    %c0_4 = arith.constant 0 : index
    %3 = vector.load %arg3[%c0_3, %c0_4] : memref<1x256xf32, #tpu.memory_space<vmem>>, vector<1x256xf32>
    %4 = vector.broadcast %3 : vector<1x256xf32> to vector<8x256xf32>
    %5 = arith.addf %2, %4 : vector<8x256xf32>
    %cst_5 = arith.constant 0.000000e+00 : f32
    %6 = vector.broadcast %cst_5 : f32 to vector<8x256xf32>
    %7 = arith.maximumf %5, %6 : vector<8x256xf32>
    %c0_6 = arith.constant 0 : index
    %c0_7 = arith.constant 0 : index
    %8 = vector.load %arg4[%c0_6, %c0_7] : memref<256x128xf32, #tpu.memory_space<vmem>>, vector<256x128xf32>
    %cst_8 = arith.constant dense<0.000000e+00> : vector<8x128xf32>
    %9 = tpu.matmul %7, %8, %cst_8 {dimension_numbers = #tpu.dot_dimension_numbers<[1], [0], [0], [1], [0, 0, 1, 1], [], []>} : vector<8x256xf32>, vector<256x128xf32>, vector<8x128xf32> -> vector<8x128xf32>
    %c0_9 = arith.constant 0 : index
    %c0_10 = arith.constant 0 : index
    %10 = vector.load %arg5[%c0_9, %c0_10] : memref<1x128xf32, #tpu.memory_space<vmem>>, vector<1x128xf32>
    %11 = vector.broadcast %10 : vector<1x128xf32> to vector<8x128xf32>
    %12 = arith.addf %9, %11 : vector<8x128xf32>
    %cst_11 = arith.constant 0.000000e+00 : f32
    %13 = vector.broadcast %cst_11 : f32 to vector<8x128xf32>
    %14 = arith.maximumf %12, %13 : vector<8x128xf32>
    %c0_12 = arith.constant 0 : index
    %c0_13 = arith.constant 0 : index
    %15 = vector.load %arg6[%c0_12, %c0_13] : memref<128x8xf32, #tpu.memory_space<vmem>>, vector<128x8xf32>
    %cst_14 = arith.constant dense<0.000000e+00> : vector<8x8xf32>
    %16 = tpu.matmul %14, %15, %cst_14 {dimension_numbers = #tpu.dot_dimension_numbers<[1], [0], [0], [1], [0, 0, 1, 1], [], []>} : vector<8x128xf32>, vector<128x8xf32>, vector<8x8xf32> -> vector<8x8xf32>
    %c0_15 = arith.constant 0 : index
    %c0_16 = arith.constant 0 : index
    %17 = vector.load %arg7[%c0_15, %c0_16] : memref<1x8xf32, #tpu.memory_space<vmem>>, vector<1x8xf32>
    %18 = vector.broadcast %17 : vector<1x8xf32> to vector<8x8xf32>
    %19 = arith.addf %16, %18 : vector<8x8xf32>
    %20 = vector.extract_strided_slice %19 {offsets = [0, 0], sizes = [8, 4], strides = [1, 1]} : vector<8x8xf32> to vector<8x4xf32>
    %21 = vector.extract_strided_slice %19 {offsets = [0, 4], sizes = [8, 4], strides = [1, 1]} : vector<8x8xf32> to vector<8x4xf32>
    %cst_17 = arith.constant 0.000000e+00 : f32
    %22 = vector.broadcast %cst_17 : f32 to vector<8x4xf32>
    %23 = arith.maximumf %21, %22 : vector<8x4xf32>
    %24 = math.absf %21 : vector<8x4xf32>
    %cst_18 = arith.constant 0.000000e+00 : f32
    %25 = vector.broadcast %cst_18 : f32 to vector<8x4xf32>
    %26 = arith.subf %25, %24 : vector<8x4xf32>
    %27 = math.exp %26 : vector<8x4xf32>
    %28 = math.log1p %27 : vector<8x4xf32>
    %29 = arith.addf %23, %28 : vector<8x4xf32>
    %c0_19 = arith.constant 0 : index
    %c0_20 = arith.constant 0 : index
    %30 = vector.load %arg8[%c0_19, %c0_20] : memref<8x4xf32, #tpu.memory_space<vmem>>, vector<8x4xf32>
    %31 = arith.mulf %29, %30 : vector<8x4xf32>
    %32 = arith.addf %20, %31 : vector<8x4xf32>
    %33 = arith.mulf %30, %30 : vector<8x4xf32>
    %cst_21 = arith.constant -5.000000e-01 : f32
    %34 = vector.broadcast %cst_21 : f32 to vector<8x4xf32>
    %35 = arith.mulf %34, %33 : vector<8x4xf32>
    %36 = math.log %29 : vector<8x4xf32>
    %37 = arith.subf %35, %36 : vector<8x4xf32>
    %cst_22 = arith.constant 0.918938517 : f32
    %38 = vector.broadcast %cst_22 : f32 to vector<8x4xf32>
    %39 = arith.subf %37, %38 : vector<8x4xf32>
    %40 = math.tanh %32 : vector<8x4xf32>
    %41 = arith.mulf %40, %40 : vector<8x4xf32>
    %cst_23 = arith.constant 1.000000e+00 : f32
    %42 = vector.broadcast %cst_23 : f32 to vector<8x4xf32>
    %43 = arith.subf %42, %41 : vector<8x4xf32>
    %cst_24 = arith.constant 1.000000e-07 : f32
    %44 = vector.broadcast %cst_24 : f32 to vector<8x4xf32>
    %45 = arith.addf %43, %44 : vector<8x4xf32>
    %46 = math.log %45 : vector<8x4xf32>
    %47 = arith.subf %39, %46 : vector<8x4xf32>
    %c0_25 = arith.constant 0 : index
    %c0_26 = arith.constant 0 : index
    %48 = vector.load %arg9[%c0_25, %c0_26] : memref<8x4xf32, #tpu.memory_space<vmem>>, vector<8x4xf32>
    tpu.vector_store %arg9[%c0_25, %c0_26], %40 {strides = array<i32>} : memref<8x4xf32, #tpu.memory_space<vmem>>, vector<8x4xf32>,
    %c0_i32 = arith.constant 0 : i32
    %49 = arith.cmpi eq, %arg0, %c0_i32 : i32
    %50 = arith.extui %49 : i1 to i32
    %c0_i32_27 = arith.constant 0 : i32
    %51 = arith.cmpi ne, %50, %c0_i32_27 : i32
    scf.if %51 {
      %cst_33 = arith.constant 0.000000e+00 : f32
      %c0_34 = arith.constant 0 : index
      %c0_35 = arith.constant 0 : index
      %59 = memref.load %arg10[%c0_34, %c0_35] : memref<1x1xf32, #tpu.memory_space<smem>>
      memref.store %cst_33, %arg10[%c0_34, %c0_35] : memref<1x1xf32, #tpu.memory_space<smem>>
    } else {
    }
    %c0_28 = arith.constant 0 : index
    %c0_29 = arith.constant 0 : index
    %52 = memref.load %arg10[%c0_28, %c0_29] : memref<1x1xf32, #tpu.memory_space<smem>>
    %53 = vector.shape_cast %47 : vector<8x4xf32> to vector<1x8x4xf32>
    %cst_30 = arith.constant dense<0.000000e+00> : vector<1xf32>
    %54 = vector.multi_reduction <add>, %53, %cst_30 [1, 2] : vector<1x8x4xf32> to vector<1xf32>
    %55 = vector.shape_cast %54 : vector<1xf32> to vector<1x1x1xf32>
    %56 = vector.extract %55[0, 0, 0] : f32 from vector<1x1x1xf32>
    %57 = arith.addf %52, %56 : f32
    %c0_31 = arith.constant 0 : index
    %c0_32 = arith.constant 0 : index
    %58 = memref.load %arg10[%c0_31, %c0_32] : memref<1x1xf32, #tpu.memory_space<smem>>
    memref.store %57, %arg10[%c0_31, %c0_32] : memref<1x1xf32, #tpu.memory_space<smem>>
    return
  }
  func.func @transform_0(%arg0: i32) -> (i32, i32) {
    %c0_i32 = arith.constant 0 : i32
    %c0_i32_0 = arith.constant 0 : i32
    return %arg0, %c0_i32 : i32, i32
  }
  func.func @transform_1(%arg0: i32) -> (i32, i32) {
    %c0_i32 = arith.constant 0 : i32
    %c0_i32_0 = arith.constant 0 : i32
    %c0_i32_1 = arith.constant 0 : i32
    return %c0_i32, %c0_i32_0 : i32, i32
  }
  func.func @transform_2(%arg0: i32) -> (i32, i32) {
    %c0_i32 = arith.constant 0 : i32
    %c0_i32_0 = arith.constant 0 : i32
    %c0_i32_1 = arith.constant 0 : i32
    return %c0_i32, %c0_i32_0 : i32, i32
  }
  func.func @transform_3(%arg0: i32) -> (i32, i32) {
    %c0_i32 = arith.constant 0 : i32
    %c0_i32_0 = arith.constant 0 : i32
    %c0_i32_1 = arith.constant 0 : i32
    return %c0_i32, %c0_i32_0 : i32, i32
  }
  func.func @transform_4(%arg0: i32) -> (i32, i32) {
    %c0_i32 = arith.constant 0 : i32
    %c0_i32_0 = arith.constant 0 : i32
    %c0_i32_1 = arith.constant 0 : i32
    return %c0_i32, %c0_i32_0 : i32, i32
  }
  func.func @transform_5(%arg0: i32) -> (i32, i32) {
    %c0_i32 = arith.constant 0 : i32
    %c0_i32_0 = arith.constant 0 : i32
    %c0_i32_1 = arith.constant 0 : i32
    return %c0_i32, %c0_i32_0 : i32, i32
  }
  func.func @transform_6(%arg0: i32) -> (i32, i32) {
    %c0_i32 = arith.constant 0 : i32
    %c0_i32_0 = arith.constant 0 : i32
    %c0_i32_1 = arith.constant 0 : i32
    return %c0_i32, %c0_i32_0 : i32, i32
  }
  func.func @transform_7(%arg0: i32) -> (i32, i32) {
    %c0_i32 = arith.constant 0 : i32
    %c0_i32_0 = arith.constant 0 : i32
    return %arg0, %c0_i32 : i32, i32
  }
  func.func @transform_8(%arg0: i32) -> (i32, i32) {
    %c0_i32 = arith.constant 0 : i32
    %c0_i32_0 = arith.constant 0 : i32
    return %arg0, %c0_i32 : i32, i32
  }
  func.func @transform_9(%arg0: i32) -> (i32, i32) {
    %c0_i32 = arith.constant 0 : i32
    %c0_i32_0 = arith.constant 0 : i32
    %c0_i32_1 = arith.constant 0 : i32
    return %c0_i32, %c0_i32_0 : i32, i32
  }
}

</mosaic_0001>

<bundles_post_ra>
// kernel: tpu_custom_call.1
= control target key start
LH: loop header
LB: loop body
LE: loop exit
PB: predicated region body
PF: predicated region fallthrough
CT: control target
= control target key end

     0   :  { %15 = vsyncpa [#allocation3], 0  ;;  %s786_s0 = inlined_call_operand.vmem [shape: f32[8,8], index: 0, kind: input, shape index: {}]   ;;  %s787_s1 = inlined_call_operand.vmem [shape: f32[8,256], index: 1, kind: input, shape index: {}]   ;;  %s788_s2 = inlined_call_operand.vmem [shape: f32[1,256], index: 2, kind: input, shape index: {}]   ;;  %s789_s3 = inlined_call_operand.hbm [shape: f32[256,128], index: 3, kind: input, shape index: {}]   ;;  %s790_s4 = inlined_call_operand.vmem [shape: f32[1,128], index: 4, kind: input, shape index: {}]   ;;  %s791_s5 = inlined_call_operand.vmem [shape: f32[128,8], index: 5, kind: input, shape index: {}]   ;;  %s792_s6 = inlined_call_operand.vmem [shape: f32[1,8], index: 6, kind: input, shape index: {}]   ;;  %s793_s7 = inlined_call_operand.vmem [shape: f32[8,4], index: 7, kind: input, shape index: {}]   ;;  %s794_s8 = inlined_call_operand.vmem [shape: f32[8,4], index: 8, kind: output, shape index: {0}]   ;;  %s795_s9 = inlined_call_operand.hbm [shape: f32[1,1], index: 9, kind: output, shape index: {1}]  }
   0x1   :  { %16 = vsyncpa [#allocation4], 0  ;;  %s629_s30 = smov [#allocation2]   ;;  %s593_s13 = scalar_lea.hbm %s789_s3, 4096 }
   0x2   :  { %s28_s10 = sshll.u32 %s629_s30, 4  ;;  %p594_p0 = scmp.ne.s32.totalorder %s789_s3, %s593_s13  ;;  %s29_s10 = int_to_ptr.vmem [resolvable:$true] %s28_s10 }
   0x3   :  { %p597_p1 = scmp.lt.u32.totalorder %s593_s13, %s789_s3 }
   0x5   :  { %p599_p2 = pnand %p597_p1, %p594_p0 }
   0x7   :  { %602 = shalt.err (!%p599_p2)
}
   0x8   :  { %s603_s18 = scalar_lea.vmem %s29_s10, 4096  ;;  %p608_p4 = scmp.lt.s32.totalorder %s29_s10, %s29_s10 }
   0x9   :  { %p604_p3 = scmp.ne.s32.totalorder %s29_s10, %s603_s18  ;;  %p609_p5 = scmp.lt.s32.totalorder %s603_s18, %s603_s18 }
   0xb   :  { %p610_p6 = por %p609_p5, %p608_p4 }
   0xd   :  { %p611_p7 = pnand %p610_p6, %p604_p3 }
   0xf   :  { %614 = shalt.err (!%p611_p7)
}
  0x10   :  { %s630_s19 = smov 128   ;;  %s631_s20 = smov 8  }
  0x11   :  { %34 = dma.hbm_to_vmem [thread:$0]  %s789_s3, 4096, %s29_s10, [#allocation3], %s630_s19, %s630_s19, %s631_s20  }
  0x12   :  { %625 = dma.done.wait [#allocation3], 4096  }
  0x13   :  { %626 = vsyncadd [#allocation3], 4294963200  ;;  %v632_v0 = vmov 0.0   ;;  %v48_v1 = vld [vmem:[%s787_s1 + $0x8] sm:$0xff]  ;;  %v47_v2 = vld [vmem:[%s787_s1] sm:$0xff]  ;;  %vm61_vm0 = vcmask 64512  }
  0x14   :  { %129 = vmatprep.mubr.f32.mxu0 %v632_v0  ;;  %v46_v3 = vld [vmem:[%s786_s0] sm:$0xff]  ;;  %65 = vmatprep.subr.mxu0 %v48_v1  ;;  %v155_v5 = vld [vmem:[#allocation2 + $0x88] sm:$0xff]  ;;  %v156_v9 = vld [vmem:[#allocation2 + $0x90] sm:$0xff]  ;;  %v633_v55 = vmov 0.0|0.0   ;;  %vm634_vm1 = vmmov 0   ;;  %s635_s16 = smov 4  }
  0x15   :  { %v154_v4 = vld [vmem:[#allocation2 + $0x80] sm:$0xff]  ;;  %66 = vmatpush1.msra.mxu0 %v47_v2  ;;  %v139_v8 = vld [vmem:[#allocation2 + $0x8] sm:$0xff]  ;;  %v157_v10 = vld [vmem:[#allocation2 + $0x98] sm:$0xff]  ;;  %vm384_vm3 = vcmask 31744   ;;  %s615_s22 = scalar_lea.hbm %s795_s9, 16 }
  0x16   :  { %v138_v6 = vld [vmem:[#allocation2] sm:$0xff]  ;;  %v515_v7 = vpack.c.bf16 %v155_v5, %v154_v4  ;;  %424 = vmatmul.mubr.msk.f32.vlgmr.msra.gmra.mrb[0].mxu0 %vm61_vm0, %v46_v3  ;;  %v519_v12 = vpack.c.bf16 %v157_v10, %v156_v9  ;;  %v140_v13 = vld [vmem:[#allocation2 + $0x10] sm:$0xff]  ;;  %v141_v14 = vld [vmem:[#allocation2 + $0x18] sm:$0xff]  ;;  %547 = vmatprep.subr.bf16.mxu0 %v633_v55  ;;  %p616_p8 = scmp.ne.s32.totalorder %s795_s9, %s615_s22  ;;  %p619_p9 = scmp.lt.u32.totalorder %s615_s22, %s795_s9 }
  0x17   :  { %v517_v11 = vpack.c.bf16 %v139_v8, %v138_v6  ;;  %v158_v15 = vld [vmem:[#allocation2 + $0xa0] sm:$0xff]  ;;  %v159_v16 = vld [vmem:[#allocation2 + $0xa8] sm:$0xff]  ;;  %v521_v17 = vpack.c.bf16 %v141_v14, %v140_v13  ;;  %v160_v21 = vld [vmem:[#allocation2 + $0xb0] sm:$0xff]  ;;  %v51_v8 = vlaneseq  ;;  %512 = vmatprep.mubr.msk.f32.mxu0 %vm634_vm1, %v632_v0 }
  0x18   :  { %516 = vmatprep.subr.bf16.mxu1 %v515_v7  ;;  %v523_v18 = vpack.c.bf16 %v159_v16, %v158_v15  ;;  %v142_v19 = vld [vmem:[#allocation2 + $0x20] sm:$0xff]  ;;  %v143_v20 = vld [vmem:[#allocation2 + $0x28] sm:$0xff]  ;;  %v161_v22 = vld [vmem:[#allocation2 + $0xb8] sm:$0xff]  ;;  %p621_p10 = pnand %p619_p9, %p616_p8 }
  0x19   :  { %518 = vmatpush3.bf16.msra.mxu1 %v517_v11  ;;  %v525_v23 = vpack.c.bf16 %v143_v20, %v142_v19  ;;  %v527_v24 = vpack.c.bf16 %v161_v22, %v160_v21  ;;  %v144_v25 = vld [vmem:[#allocation2 + $0x30] sm:$0xff]  ;;  %v145_v26 = vld [vmem:[#allocation2 + $0x38] sm:$0xff]  ;;  %v162_v27 = vld [vmem:[#allocation2 + $0xc0] sm:$0xff]  ;;  %v52_v9 = vshrl.u32 %v51_v8, 7 }
  0x1a   :  { %520 = vmatprep.subr.bf16.mxu1 %v519_v12  ;;  %v163_v28 = vld [vmem:[#allocation2 + $0xc8] sm:$0xff]  ;;  %v529_v29 = vpack.c.bf16 %v145_v26, %v144_v25  ;;  %v146_v31 = vld [vmem:[#allocation2 + $0x40] sm:$0xff]  ;;  %v164_v33 = vld [vmem:[#allocation2 + $0xd0] sm:$0xff] }
  0x1b   :  { %v531_v30 = vpack.c.bf16 %v163_v28, %v162_v27  ;;  %v147_v32 = vld [vmem:[#allocation2 + $0x48] sm:$0xff]  ;;  %v165_v34 = vld [vmem:[#allocation2 + $0xd8] sm:$0xff]  ;;  %v148_v37 = vld [vmem:[#allocation2 + $0x50] sm:$0xff]  ;;  %v53_v10 = vsub.s32 0, %v52_v9  ;;  %v57_v12 = vsub.s32 1, %v52_v9 }
  0x1c   :  { %v533_v35 = vpack.c.bf16 %v147_v32, %v146_v31  ;;  %v535_v36 = vpack.c.bf16 %v165_v34, %v164_v33  ;;  %v149_v38 = vld [vmem:[#allocation2 + $0x58] sm:$0xff]  ;;  %v166_v39 = vld [vmem:[#allocation2 + $0xe0] sm:$0xff]  ;;  %v167_v40 = vld [vmem:[#allocation2 + $0xe8] sm:$0xff] }
  0x1d   :  { %522 = vmatpush3.bf16.msra.mxu1 %v521_v17  ;;  %v537_v41 = vpack.c.bf16 %v149_v38, %v148_v37  ;;  %v539_v42 = vpack.c.bf16 %v167_v40, %v166_v39  ;;  %v150_v43 = vld [vmem:[#allocation2 + $0x60] sm:$0xff]  ;;  %v151_v44 = vld [vmem:[#allocation2 + $0x68] sm:$0xff]  ;;  %v168_v46 = vld [vmem:[#allocation2 + $0xf0] sm:$0xff] }
  0x1e   :  { %524 = vmatprep.subr.bf16.mxu1 %v523_v18  ;;  %v541_v45 = vpack.c.bf16 %v151_v44, %v150_v43  ;;  %v169_v47 = vld [vmem:[#allocation2 + $0xf8] sm:$0xff]  ;;  %v152_v49 = vld [vmem:[#allocation2 + $0x70] sm:$0xff]  ;;  %v248_v52 = vld [vmem:[%s791_s5] sm:$0xff] }
  0x1f   :  { %v543_v48 = vpack.c.bf16 %v169_v47, %v168_v46  ;;  %v153_v50 = vld [vmem:[#allocation2 + $0x78] sm:$0xff]  ;;  %v249_v53 = vld [vmem:[%s791_s5 + $0x8] sm:$0xff]  ;;  %v250_v54 = vld [vmem:[%s791_s5 + $0x10] sm:$0xff] }
  0x20   :  { %v545_v51 = vpack.c.bf16 %v153_v50, %v152_v49  ;;  %v548_v56 = vpack.c.bf16 %v249_v53, %v248_v52  ;;  %v251_v57 = vld [vmem:[%s791_s5 + $0x18] sm:$0xff]  ;;  %v252_v59 = vld [vmem:[%s791_s5 + $0x20] sm:$0xff]  ;;  %v253_v60 = vld [vmem:[%s791_s5 + $0x28] sm:$0xff] }
  0x21   :  { %526 = vmatpush3.bf16.msra.mxu1 %v525_v23  ;;  %v551_v58 = vpack.c.bf16 %v251_v57, %v250_v54  ;;  %v554_v61 = vpack.c.bf16 %v253_v60, %v252_v59  ;;  %v254_v62 = vld [vmem:[%s791_s5 + $0x30] sm:$0xff]  ;;  %v255_v63 = vld [vmem:[%s791_s5 + $0x38] sm:$0xff]  ;;  %v256_v2 = vld [vmem:[%s791_s5 + $0x40] sm:$0xff] }
  0x22   :  { %528 = vmatprep.subr.bf16.mxu1 %v527_v24  ;;  %549 = vmatpush3.bf16.msra.mxu0 %v548_v56  ;;  %v557_v1 = vpack.c.bf16 %v255_v63, %v254_v62  ;;  %v257_v3 = vld [vmem:[%s791_s5 + $0x48] sm:$0xff]  ;;  %v258_v5 = vld [vmem:[%s791_s5 + $0x50] sm:$0xff]  ;;  %v259_v6 = vld [vmem:[%s791_s5 + $0x58] sm:$0xff] }
  0x23   :  { %550 = vmatprep.subr.bf16.mxu0 %v633_v55  ;;  %v560_v4 = vpack.c.bf16 %v257_v3, %v256_v2  ;;  %v563_v7 = vpack.c.bf16 %v259_v6, %v258_v5  ;;  %v49_v11 = vld [vmem:[%s788_s2] sm:$0x3]  ;;  %v261_v22 = vld [vmem:[%s791_s5 + $0x68] sm:$0xff]  ;;  %v262_v24 = vld [vmem:[%s791_s5 + $0x70] sm:$0xff] }
  0x24   :  { %v54_v13 = vrot.slane %v49_v11, %v53_v10  ;;  %v58_v14 = vrot.slane %v49_v11, %v57_v12  ;;  %v260_v21 = vld [vmem:[%s791_s5 + $0x60] sm:$0xff]  ;;  %v263_v25 = vld [vmem:[%s791_s5 + $0x78] sm:$0xff] }
  0x25   :  { %530 = vmatpush3.bf16.msra.mxu1 %v529_v29  ;;  %v566_v23 = vpack.c.bf16 %v261_v22, %v260_v21  ;;  %v569_v26 = vpack.c.bf16 %v263_v25, %v262_v24  ;;  %v356_v27 = vld [vmem:[%s793_s7] sm:$0xff] }
  0x26   :  { %532 = vmatprep.subr.bf16.mxu1 %v531_v30  ;;  %552 = vmatpush3.bf16.msra.mxu0 %v551_v58  ;;  %v425_v29 = vld [vmem:[%s790_s4] ss:$0 sm:$0xff]  ;;  %s636_s4 = smov 124  }
  0x27   :  { %553 = vmatprep.subr.bf16.mxu0 %v633_v55  ;;  %358 = vrot.lane.b32.xlu0 %v356_v27, %s635_s16  ;;  %v426_v0 = vld [vmem:[%s792_s6] ss:$0 sm:$0xff] }
  0x29   :  { %534 = vmatpush3.bf16.msra.mxu1 %v533_v35 }
  0x2a   :  { %536 = vmatprep.subr.bf16.mxu1 %v535_v36  ;;  %555 = vmatpush3.bf16.msra.mxu0 %v554_v61  ;;  %v367_v61 = vmul.f32 %v356_v27, %v356_v27 }
  0x2b   :  { %556 = vmatprep.subr.bf16.mxu0 %v633_v55 }
  0x2c   :  { %v368_v62 = vmul.f32 -0.5, %v367_v61 }
  0x2d   :  { %538 = vmatpush3.bf16.msra.mxu1 %v537_v41 }
  0x2e   :  { %540 = vmatprep.subr.bf16.mxu1 %v539_v42  ;;  %558 = vmatpush3.bf16.msra.mxu0 %v557_v1 }
  0x2f   :  { %559 = vmatprep.subr.bf16.mxu0 %v633_v55 }
  0x31   :  { %542 = vmatpush3.bf16.msra.mxu1 %v541_v45 }
  0x32   :  { %544 = vmatprep.subr.bf16.mxu1 %v543_v48  ;;  %561 = vmatpush3.bf16.msra.mxu0 %v560_v4 }
  0x33   :  { %562 = vmatprep.subr.bf16.mxu0 %v633_v55 }
  0x35   :  { %546 = vmatpush3.bf16.msra.mxu1 %v545_v51 }
  0x36   :  { %564 = vmatpush3.bf16.msra.mxu0 %v563_v7 }
  0x37   :  { %565 = vmatprep.subr.bf16.mxu0 %v633_v55 }
  0x3a   :  { %567 = vmatpush3.bf16.msra.mxu0 %v566_v23 }
  0x3b   :  { %568 = vmatprep.subr.bf16.mxu0 %v633_v55 }
  0x3e   :  { %570 = vmatpush3.bf16.msra.mxu0 %v569_v26 }
  0x99   :  { %v359_v49 = vpop.permute.xlu0 %358 }
  0xe9   :  { %v131_v15 = vpop.f32.mrb[0].mxu0 }
  0xea   :  { %v132_v16 = vadd.f32 %v131_v15, %v54_v13  ;;  %v133_v17 = vpop.f32.mrb[1].mxu0 }
  0xeb   :  { %v134_v18 = vadd.f32 %v133_v17, %v58_v14 }
  0xec   :  { %v136_v20 = vmax.f32 %v132_v16, 0.0 }
  0xed   :  { %v137_v19 = vmax.f32 %v134_v18, 0.0 }
  0xef   :  { %241 = vmatprep.mubr.f32.mxu1 %v137_v19 }
  0xf0   :  { %242 = vmatmul.mubr.f32.vlgmr.msra.gmra.mrb[0].mxu1 %v136_v20 }
 0x1c3   :  { %v460_v28 = vpop.f32.mrb[0].mxu1 }
 0x1c4   :  { %v461_v30 = vpop.f32.mrb[1].mxu1 }
 0x1c5   :  { %v462_v31 = vadd.f32 %v461_v30, %v460_v28 }
 0x1c7   :  { %v244_v32 = vadd.f32 %v462_v31, %v425_v29 }
 0x1c9   :  { %v247_v33 = vmax.f32 %v244_v32, 0.0 }
 0x1cb   :  { %513 = vmatmul.mubr.f32.vlgmr.msra.gmra.mrb[2].mxu0 %v247_v33 }
 0x29e   :  { %v337_v34 = vpop.f32.mrb[2].mxu0 }
 0x29f   :  { %v338_v35 = vadd.f32 %v426_v0, %v337_v34  ;;  %v514_v36 = vpop.f32.mrb[3].mxu0 }
 0x2a1   :  { %v342_v37 = vand.u32 2147483647, %v338_v35  ;;  %v341_v48 = vmax.f32 %v338_v35, 0.0 }
 0x2a3   :  { %v343_v38 = vsub.f32 0.0, %v342_v37 }
 0x2a5   :  { %v344_v39 = vmul.f32 1.442695, %v343_v38 }
 0x2a7   :  { %583 = vpow2.f32 %v344_v39 }
 0x2b1   :  { %v584_v40 = vpop.eup %583 }
 0x2b2   :  { %v346_v41 = vadd.f32 1.0, %v584_v40  ;;  %v349_v42 = vmul.f32 -0.5, %v584_v40  ;;  %v352_v44 = vand.u32 2147483647, %v584_v40 }
 0x2b4   :  { %585 = vlog2.f32 %v346_v41  ;;  %v350_v43 = vadd.f32 1.0, %v349_v42  ;;  %vm353_vm2 = vcmp.lt.f32.partialorder %v352_v44, 0.0004427343 }
 0x2b6   :  { %v351_v47 = vmul.f32 %v584_v40, %v350_v43 }
 0x2be   :  { %v586_v45 = vpop.eup %585 }
 0x2bf   :  { %v348_v46 = vmul.f32 0.6931472, %v586_v45 }
 0x2c1   :  { %v354_v50 = vsel %vm353_vm2, %v351_v47, %v348_v46 }
 0x2c2   :  { %v355_v51 = vadd.f32 %v354_v50, %v341_v48 }
 0x2c4   :  { %v361_v52 = vmul.f32 %v359_v49, %v355_v51  ;;  %587 = vlog2.f32 %v355_v51 }
 0x2c6   :  { %363 = vrot.lane.b32.xlu0 %v361_v52, %s636_s4 }
 0x2ce   :  { %v588_v53 = vpop.eup %587 }
 0x2cf   :  { %v370_v54 = vmul.f32 0.6931472, %v588_v53 }
 0x2d1   :  { %372 = vrot.lane.b32.xlu1 %v370_v54, %s636_s4 }
 0x338   :  { %v364_v55 = vpop.permute.xlu0 %363 }
 0x339   :  { %v366_v56 = vadd.f32 %v364_v55, %v338_v35 }
 0x33b   :  { %589 = vtanh.f32 %v366_v56 }
 0x343   :  { %v373_v63 = vpop.permute.xlu1 %372 }
 0x344   :  { %v375_v1 = vsub.f32 %v368_v62, %v373_v63 }
 0x345   :  { %v590_v57 = vpop.eup %589 }
 0x346   :  { %v378_v58 = vmul.f32 %v590_v57, %v590_v57  ;;  %385 = vst.msk [vmem:[%s794_s8] sm:$0xff] %vm384_vm3, %v590_v57  ;;  %v427_v3 = vadd.f32 -0.9189385, %v375_v1 }
 0x348   :  { %v379_v59 = vsub.f32 1.0, %v378_v58 }
 0x34a   :  { %v380_v60 = vadd.f32 1e-07, %v379_v59 }
 0x34c   :  { %591 = vlog2.f32 %v380_v60 }
 0x356   :  { %v592_v2 = vpop.eup %591 }
 0x357   :  { %v382_v4 = vmul.f32 0.6931472, %v592_v2 }
 0x359   :  { %v383_v5 = vsub.f32 %v427_v3, %v382_v4 }
 0x35b   :  { %v393_v6 = vsel %vm384_vm3, %v383_v5, 0.0 }
 0x35c   :  { %394 = vadd.xlane.f32.xlu1 %v393_v6 }
 0x3e9   :  { %v395_v7 = vpop.xlane.xlu1 %394 }
 0x3ea   :  { %v396_v8 = vrot.slane %v395_v7, 4 }
 0x3ec   :  { %v397_v9 = vadd.f32 %v396_v8, %v395_v7 }
 0x3ee   :  { %v398_v10 = vrot.slane %v397_v9, 2 }
 0x3f0   :  { %v399_v11 = vadd.f32 %v398_v10, %v397_v9 }
 0x3f2   :  { %v400_v12 = vrot.slane %v399_v11, 1 }
 0x3f4   :  { %v401_v13 = vadd.f32 %v400_v12, %v399_v11 }
 0x3f6   :  { %571 = vpush %v401_v13 }
 0x427   :  { %s572_s8 = spop %571 }
 0x428   :  { %405 = sst [smem:[#allocation5]] %s572_s8 }
 0x429   :  { %624 = shalt.err (!%p621_p10)
}
 0x42a   :  { %s637_s27 = smov [#allocation5]  }
 0x42b   :  { %415 = dma.smem_to_hbm %s637_s27, 16, %s795_s9, [#allocation4]  }
 0x42c   :  { %627 = dma.done.wait [#allocation4], 16  }
 0x42d   :  { %628 = vsyncadd [#allocation4], 4294967280 }
 0x42e   :  { %421 = sfence }
 0x42f   :  { %422 = vsyncpa [#allocation3], 1 }
 0x430   :  { %423 = vsyncpa [#allocation4], 1 }

</bundles_post_ra>
